<compile_context>
chip_gen: v5e
topology: v5e:2x2
jax: 0.10.0
libtpu: 0.0.40
codegen_flags: <defaults>
</compile_context>

<pallas_src>
import functools

import jax
import jax.numpy as jnp
import numpy as np
from jax.experimental import pallas as pl
from jax.experimental.pallas import tpu as pltpu


def _round_up(v, m):
    return (v + m - 1) // m * m


def _pick_tile_h(H, N, tile_h):
    """Largest divisor of H that is <= tile_h; keeps >= 2 grid programs when N == 1."""
    cap = max(1, min(int(tile_h), H))
    if N == 1 and H > 1:
        cap = min(cap, max(1, H // 2))  # v7x has 2 TensorCores: never collapse to 1 program
    for th in range(cap, 0, -1):
        if H % th == 0:
            return th
    return 1


_HAS_BUFFERED = hasattr(pl, "Buffered")


def _const_spec(shape):
    """BlockSpec for a grid-invariant operand; single-buffered when supported."""
    idx = lambda n, hh: (0,) * len(shape)
    if _HAS_BUFFERED:
        try:
            return pl.BlockSpec(shape, idx, pipeline_mode=pl.Buffered(1))
        except TypeError:  # older BlockSpec without pipeline_mode
            pass
    return pl.BlockSpec(shape, idx)


@functools.partial(jax.jit,
                   static_argnames=("tile_h", "use_bf16", "vmem_limit_bytes"))
def bottleneck_pallas(x, w1, s1, b1, w2, s2, b2, w3, s3, b3, *,
                      tile_h=32, use_bf16=True,
                      vmem_limit_bytes=48 * 1024 * 1024):
    """Bottleneck forward (NHWC).

    x : (N, H, W, Cin) f32.
    w1: (Cin, P)   1x1 conv weight (PyTorch (P,Cin,1,1) transposed)
    w2: (9, P, P)  3x3 conv weight (PyTorch (P,P,3,3) -> (kh*kw, in, out))
    w3: (P, Cout)  1x1 conv weight
    s*, b*: inference-mode BatchNorm folded to per-channel scale/shift, shape (C,).
    use_bf16: bf16 MXU operands (f32 accumulation / f32 VPU math).  Default True.
    """
    N, H, W, Cin = x.shape
    P = w1.shape[1]
    Cout = w3.shape[1]
    # stride=1 / downsample=None -> identity residual; fail loudly on misuse.
    assert Cin == Cout, "identity residual requires inplanes == planes * expansion"
    assert w2.shape == (9, P, P) and w3.shape == (P, Cout)
    assert W >= 2

    LANE = 128
    Pp = _round_up(P, LANE)
    Cp = _round_up(Cin, LANE)
    mm_dtype = jnp.bfloat16 if use_bf16 else jnp.float32

    # Fold BN scale into the conv weights; keep only the shift for the kernel.
    w1f = w1 * s1[None, :]
    w2f = w2 * s2[None, None, :]
    w3f = w3 * s3[None, :]

    # Pad channel dims to lane multiples (zero rows/cols leave results unchanged).
    w1p = jnp.pad(w1f, ((0, Cp - Cin), (0, Pp - P))).astype(mm_dtype)
    w3p = jnp.pad(w3f, ((0, Pp - P), (0, Cp - Cout))).astype(mm_dtype)
    # conv2 weight: dy-stacked on K (rows), dx-grouped on N (cols) -> (3*Pp, 3*Pp).
    # Block (kh, kw) lives at rows [kh*Pp:(kh+1)*Pp], cols [kw*Pp:(kw+1)*Pp].
    w2p = jnp.pad(w2f, ((0, 0), (0, Pp - P), (0, Pp - P)))            # (9, Pp, Pp)
    w2s = (w2p.reshape(3, 3, Pp, Pp)                                   # (kh, kw, in, out)
              .transpose(0, 2, 1, 3)                                   # (kh, in, kw, out)
              .reshape(3 * Pp, 3 * Pp)
              .astype(mm_dtype))

    b1p = jnp.pad(b1, (0, Pp - P)).reshape(1, Pp).astype(jnp.float32)
    b2p = jnp.pad(b2, (0, Pp - P)).reshape(1, Pp).astype(jnp.float32)
    b3p = jnp.pad(b3, (0, Cp - Cout)).reshape(1, Cp).astype(jnp.float32)

    # bf16 x (halves DMA + VMEM); one zero row top/bottom for the 3x3 halo; channels to
    # lane multiples; spatial pre-flattened so the kernel never reshapes activations.
    xp = jnp.pad(x.astype(mm_dtype), ((0, 0), (1, 1), (0, 0), (0, Cp - Cin)))
    xp = xp.reshape(N, (H + 2) * W, Cp)

    th = _pick_tile_h(H, N, tile_h)
    grid = (N, H // th)

    S = (th + 2) * W     # flattened halo rows per tile
    So = th * W          # flattened output rows per tile

    def kernel(x_ref, w1_ref, b1_ref, w2_ref, b2_ref, w3_ref, b3_ref, o_ref):
        # x_ref : (1, (H+2)*W, Cp) mm_dtype   w1: (Cp,Pp)  w2: (3Pp,3Pp)  w3: (Pp,Cp)
        # b*    : (1, Pp) / (1, Cp) f32       o_ref: (1, So, Cp) f32
        hh = pl.program_id(1)
        r0 = pl.multiple_of(hh * So, So)            # first flat halo row of this tile

        xh = x_ref[0, pl.ds(r0, S), :]              # (S, Cp) mm_dtype

        # ---- conv1 (1x1, BN scale folded) + shift + relu (f32 accumulation/math) ----
        t1 = jnp.dot(xh, w1_ref[...], preferred_element_type=jnp.float32)   # (S, Pp)
        t1 = jnp.maximum(t1 + b1_ref[...], 0.0)

        # conv2's zero padding acts on the conv1 *output*: halo rows outside the image
        # (which would otherwise hold relu(b1)) must be zeroed.  Only the first W flat
        # rows of the first tile and the last W flat rows of the last tile qualify.
        flat = jax.lax.broadcasted_iota(jnp.int32, (S, 1), 0)
        pad_top = jnp.logical_and(hh == 0, flat < W)
        pad_bot = jnp.logical_and(hh == pl.num_programs(1) - 1, flat >= S - W)
        h_valid = jnp.where(jnp.logical_or(pad_top, pad_bot), 0.0, 1.0)
        t1 = (t1 * h_valid).astype(mm_dtype)

        # ---- conv2 (3x3, pad=1): dy taps stacked into the MXU K dimension ----
        # A's channel blocks are the three contiguous W-aligned row slices of t1
        # (dy = -1, 0, +1 sources of each output row); one matmul, K = 3*Pp.
        a = jnp.concatenate(
            [t1[0:So, :], t1[W:W + So, :], t1[2 * W:2 * W + So, :]], axis=1)  # (So, 3Pp)
        y = jnp.dot(a, w2_ref[...], preferred_element_type=jnp.float32)      # (So, 3Pp)

        col = jax.lax.broadcasted_iota(jnp.int32, (th, W, 1), 1)
        mask_l = (col >= 1).astype(jnp.float32).reshape(So, 1)       # source col w-1 valid
        mask_r = (col <= W - 2).astype(jnp.float32).reshape(So, 1)   # source col w+1 valid

        yl = y[:, 0:Pp]            # dx = -1 contributions, computed at the source column
        yc = y[:, Pp:2 * Pp]       # dx =  0
        yr = y[:, 2 * Pp:3 * Pp]   # dx = +1
        acc = (yc
               + pltpu.roll(yl, 1, axis=0) * mask_l
               + pltpu.roll(yr, So - 1, axis=0) * mask_r)
        t2 = jnp.maximum(acc + b2_ref[...], 0.0).astype(mm_dtype)            # (So, Pp)

        # ---- conv3 (1x1) + shift + identity residual + relu ----
        t3 = jnp.dot(t2, w3_ref[...], preferred_element_type=jnp.float32)    # (So, Cp)
        res = x_ref[0, pl.ds(r0 + W, So), :].astype(jnp.float32)             # re-read
        o_ref[0] = jnp.maximum(t3 + b3_ref[...] + res, 0.0)

    out_flat = pl.pallas_call(
        kernel,
        out_shape=jax.ShapeDtypeStruct((N, H * W, Cp), jnp.float32),
        grid_spec=pltpu.PrefetchScalarGridSpec(
            num_scalar_prefetch=0,
            grid=grid,
            in_specs=[
                pl.BlockSpec((1, (H + 2) * W, Cp), lambda n, hh: (n, 0, 0)),
                _const_spec((Cp, Pp)),
                _const_spec((1, Pp)),
                _const_spec((3 * Pp, 3 * Pp)),
                _const_spec((1, Pp)),
                _const_spec((Pp, Cp)),
                _const_spec((1, Cp)),
            ],
            out_specs=pl.BlockSpec((1, So, Cp), lambda n, hh: (n, hh, 0)),
        ),
        compiler_params=pltpu.CompilerParams(
            dimension_semantics=("parallel", "parallel"),
            vmem_limit_bytes=vmem_limit_bytes),
    )(xp, w1p, b1p, w2s, b2p, w3p, b3p)

    return out_flat.reshape(N, H, W, Cp)[..., :Cout]


def bottleneck_ref(x, w1, s1, b1, w2, s2, b2, w3, s3, b3):
    # Pure-JAX reference (NHWC, f32).  HIGHEST precision so the reference itself is
    # not silently computed in reduced (bf16) precision on TPU.
    hi = jax.lax.Precision.HIGHEST
    P = w1.shape[1]
    t = jnp.einsum('nhwc,cd->nhwd', x, w1, precision=hi) * s1 + b1
    t = jnp.maximum(t, 0.0)
    w2_hwio = w2.reshape(3, 3, P, P)
    t = jax.lax.conv_general_dilated(
        t, w2_hwio, window_strides=(1, 1), padding='SAME',
        dimension_numbers=('NHWC', 'HWIO', 'NHWC'), precision=hi) * s2 + b2
    t = jnp.maximum(t, 0.0)
    t = jnp.einsum('nhwc,cd->nhwd', t, w3, precision=hi) * s3 + b3
    return jnp.maximum(t + x, 0.0)


if __name__ == "__main__":
    # Small shapes: batch=2, planes=4 (so inplanes = planes*4 = 16), spatial 8x8.
    N, H, W = 2, 8, 8
    planes = 4
    inplanes = planes * 4      # identity residual requires inplanes == planes*4
    Cout = planes * 4

    key = jax.random.PRNGKey(0)
    keys = jax.random.split(key, 16)

    x = jax.random.normal(keys[0], (N, H, W, inplanes), jnp.float32)

    # Conv weights already in matmul layout: 1x1 as [Cin, Cout]; 3x3 as [9, Cin, Cout].
    w1 = jax.random.normal(keys[1], (inplanes, planes), jnp.float32) * 0.2
    w2 = jax.random.normal(keys[2], (9, planes, planes), jnp.float32) * 0.2
    w3 = jax.random.normal(keys[3], (planes, Cout), jnp.float32) * 0.2

    # Inference-mode BatchNorm folded to per-channel scale/shift.
    eps = 1e-5
    def bn_fold(kg, kb, km, kv, c):
        gamma = 1.0 + 0.1 * jax.random.normal(kg, (c,), jnp.float32)
        beta = 0.1 * jax.random.normal(kb, (c,), jnp.float32)
        mean = 0.1 * jax.random.normal(km, (c,), jnp.float32)
        var = jnp.abs(jax.random.normal(kv, (c,), jnp.float32)) + 0.5
        scale = gamma / jnp.sqrt(var + eps)
        shift = beta - mean * scale
        return scale, shift

    s1, b1 = bn_fold(keys[4], keys[5], keys[6], keys[7], planes)
    s2, b2 = bn_fold(keys[8], keys[9], keys[10], keys[11], planes)
    s3, b3 = bn_fold(keys[12], keys[13], keys[14], keys[15], Cout)

    ref = jax.block_until_ready(
        bottleneck_ref(x, w1, s1, b1, w2, s2, b2, w3, s3, b3))

    # f32 MXU operands, two H-tiles per image (exercises halo / tile-boundary masks).
    # Tolerance 2e-2: the MXU f32 matmul implementation may differ slightly from the
    # HIGHEST-precision XLA reference; real layout/mask bugs are O(0.1-1).
    out_f32 = jax.block_until_ready(
        bottleneck_pallas(x, w1, s1, b1, w2, s2, b2, w3, s3, b3,
                          tile_h=4, use_bf16=False))
    assert out_f32.shape == (N, H, W, Cout)
    np.testing.assert_allclose(np.asarray(out_f32), np.asarray(ref),
                               rtol=2e-2, atol=2e-2)

    # Whole image per grid step (single H-tile).
    out_full = jax.block_until_ready(
        bottleneck_pallas(x, w1, s1, b1, w2, s2, b2, w3, s3, b3,
                          tile_h=8, use_bf16=False))
    np.testing.assert_allclose(np.asarray(out_full), np.asarray(ref),
                               rtol=2e-2, atol=2e-2)

    # Default path: bf16 MXU operands / bf16 x (f32 accumulation + f32 bias/ReLU math).
    out_bf16 = jax.block_until_ready(
        bottleneck_pallas(x, w1, s1, b1, w2, s2, b2, w3, s3, b3))
    np.testing.assert_allclose(np.asarray(out_bf16), np.asarray(ref),
                               rtol=6e-2, atol=6e-2)

    # N == 1: the tiler keeps >= 2 grid programs (both v7x TensorCores stay busy).
    out_n1 = jax.block_until_ready(
        bottleneck_pallas(x[:1], w1, s1, b1, w2, s2, b2, w3, s3, b3,
                          use_bf16=False))
    np.testing.assert_allclose(np.asarray(out_n1), np.asarray(ref[:1]),
                               rtol=2e-2, atol=2e-2)

    print("KERNEL_OK")
</pallas_src>

<mosaic_0001>
module attributes {stable_mosaic.version = 11 : i64} {
  func.func @kernel(%arg0: i32, %arg1: i32, %arg2: memref<1x80x128xf32, #tpu.memory_space<vmem>>, %arg3: memref<128x128xf32, #tpu.memory_space<vmem>>, %arg4: memref<1x128xf32, #tpu.memory_space<vmem>>, %arg5: memref<384x384xf32, #tpu.memory_space<vmem>>, %arg6: memref<1x128xf32, #tpu.memory_space<vmem>>, %arg7: memref<128x128xf32, #tpu.memory_space<vmem>>, %arg8: memref<1x128xf32, #tpu.memory_space<vmem>>, %arg9: memref<1x32x128xf32, #tpu.memory_space<vmem>>) attributes {dimension_semantics = [#tpu.dimension_semantics<parallel>, #tpu.dimension_semantics<parallel>], iteration_bounds = array<i64: 2, 2>, scalar_prefetch = 0 : i64, scratch_operands = 0 : i64, tpu.core_type = #tpu.core_type<tc>, window_params = [{transform_indices = @transform_0, window_bounds = array<i64: 1, 80, 128>}, {pipeline_mode = #tpu.pipeline_mode<synchronous>, transform_indices = @transform_1, window_bounds = array<i64: 128, 128>}, {pipeline_mode = #tpu.pipeline_mode<synchronous>, transform_indices = @transform_2, window_bounds = array<i64: 1, 128>}, {pipeline_mode = #tpu.pipeline_mode<synchronous>, transform_indices = @transform_3, window_bounds = array<i64: 384, 384>}, {pipeline_mode = #tpu.pipeline_mode<synchronous>, transform_indices = @transform_4, window_bounds = array<i64: 1, 128>}, {pipeline_mode = #tpu.pipeline_mode<synchronous>, transform_indices = @transform_5, window_bounds = array<i64: 128, 128>}, {pipeline_mode = #tpu.pipeline_mode<synchronous>, transform_indices = @transform_6, window_bounds = array<i64: 1, 128>}, {transform_indices = @transform_7, window_bounds = array<i64: 1, 32, 128>}]} {
    %c32_i32 = arith.constant 32 : i32
    %0 = arith.muli %arg1, %c32_i32 : i32
    %1 = tpu.assume_multiple %0, 32 : i32
    %c0 = arith.constant 0 : index
    %2 = arith.index_cast %1 : i32 to index
    %c0_0 = arith.constant 0 : index
    %3 = vector.load %arg2[%c0, %2, %c0_0] : memref<1x80x128xf32, #tpu.memory_space<vmem>>, vector<1x48x128xf32>
    %4 = vector.shape_cast %3 : vector<1x48x128xf32> to vector<48x128xf32>
    %c0_1 = arith.constant 0 : index
    %c0_2 = arith.constant 0 : index
    %5 = vector.load %arg3[%c0_1, %c0_2] : memref<128x128xf32, #tpu.memory_space<vmem>>, vector<128x128xf32>
    %cst = arith.constant dense<0.000000e+00> : vector<48x128xf32>
    %6 = tpu.matmul %4, %5, %cst {dimension_numbers = #tpu.dot_dimension_numbers<[1], [0], [0], [1], [0, 0, 1, 1], [], []>} : vector<48x128xf32>, vector<128x128xf32>, vector<48x128xf32> -> vector<48x128xf32>
    %c0_3 = arith.constant 0 : index
    %c0_4 = arith.constant 0 : index
    %7 = vector.load %arg4[%c0_3, %c0_4] : memref<1x128xf32, #tpu.memory_space<vmem>>, vector<1x128xf32>
    %8 = vector.broadcast %7 : vector<1x128xf32> to vector<48x128xf32>
    %9 = arith.addf %6, %8 : vector<48x128xf32>
    %cst_5 = arith.constant 0.000000e+00 : f32
    %10 = vector.broadcast %cst_5 : f32 to vector<48x128xf32>
    %11 = arith.maximumf %9, %10 : vector<48x128xf32>
    %12 = tpu.iota {dimensions = array<i32: 0>} : vector<48x1xi32>
    %c0_i32 = arith.constant 0 : i32
    %13 = arith.cmpi eq, %arg1, %c0_i32 : i32
    %c8_i32 = arith.constant 8 : i32
    %14 = vector.broadcast %c8_i32 : i32 to vector<48x1xi32>
    %15 = arith.cmpi slt, %12, %14 : vector<48x1xi32>
    %16 = vector.broadcast %13 : i1 to vector<48x1xi1>
    %17 = arith.andi %16, %15 : vector<48x1xi1>
    %c1_i32 = arith.constant 1 : i32
    %18 = arith.cmpi eq, %arg1, %c1_i32 : i32
    %c40_i32 = arith.constant 40 : i32
    %19 = vector.broadcast %c40_i32 : i32 to vector<48x1xi32>
    %20 = arith.cmpi sge, %12, %19 : vector<48x1xi32>
    %21 = vector.broadcast %18 : i1 to vector<48x1xi1>
    %22 = arith.andi %21, %20 : vector<48x1xi1>
    %23 = arith.ori %17, %22 : vector<48x1xi1>
    %cst_6 = arith.constant 0.000000e+00 : f32
    %cst_7 = arith.constant 1.000000e+00 : f32
    %24 = vector.broadcast %cst_6 : f32 to vector<48x1xf32>
    %25 = vector.broadcast %cst_7 : f32 to vector<48x1xf32>
    %26 = arith.select %23, %24, %25 : vector<48x1xi1>, vector<48x1xf32>
    %27 = vector.broadcast %26 : vector<48x1xf32> to vector<48x128xf32>
    %28 = arith.mulf %11, %27 : vector<48x128xf32>
    %29 = vector.extract_strided_slice %28 {offsets = [0, 0], sizes = [32, 128], strides = [1, 1]} : vector<48x128xf32> to vector<32x128xf32>
    %30 = vector.extract_strided_slice %28 {offsets = [8, 0], sizes = [32, 128], strides = [1, 1]} : vector<48x128xf32> to vector<32x128xf32>
    %31 = vector.extract_strided_slice %28 {offsets = [16, 0], sizes = [32, 128], strides = [1, 1]} : vector<48x128xf32> to vector<32x128xf32>
    %32 = tpu.concatenate %29, %30, %31 in 1 : vector<32x128xf32>, vector<32x128xf32>, vector<32x128xf32> -> vector<32x384xf32>
    %c0_8 = arith.constant 0 : index
    %c0_9 = arith.constant 0 : index
    %33 = vector.load %arg5[%c0_8, %c0_9] : memref<384x384xf32, #tpu.memory_space<vmem>>, vector<384x384xf32>
    %cst_10 = arith.constant dense<0.000000e+00> : vector<32x384xf32>
    %34 = tpu.matmul %32, %33, %cst_10 {dimension_numbers = #tpu.dot_dimension_numbers<[1], [0], [0], [1], [0, 0, 1, 1], [], []>} : vector<32x384xf32>, vector<384x384xf32>, vector<32x384xf32> -> vector<32x384xf32>
    %35 = tpu.iota {dimensions = array<i32: 1>} : vector<4x8x1xi32>
    %c1_i32_11 = arith.constant 1 : i32
    %36 = vector.broadcast %c1_i32_11 : i32 to vector<4x8x1xi32>
    %37 = arith.cmpi sge, %35, %36 : vector<4x8x1xi32>
    %38 = arith.extui %37 : vector<4x8x1xi1> to vector<4x8x1xi32>
    %39 = arith.sitofp %38 : vector<4x8x1xi32> to vector<4x8x1xf32>
    %40 = vector.shape_cast %39 : vector<4x8x1xf32> to vector<32x1xf32>
    %c6_i32 = arith.constant 6 : i32
    %41 = vector.broadcast %c6_i32 : i32 to vector<4x8x1xi32>
    %42 = arith.cmpi sle, %35, %41 : vector<4x8x1xi32>
    %43 = arith.extui %42 : vector<4x8x1xi1> to vector<4x8x1xi32>
    %44 = arith.sitofp %43 : vector<4x8x1xi32> to vector<4x8x1xf32>
    %45 = vector.shape_cast %44 : vector<4x8x1xf32> to vector<32x1xf32>
    %46 = vector.extract_strided_slice %34 {offsets = [0, 0], sizes = [32, 128], strides = [1, 1]} : vector<32x384xf32> to vector<32x128xf32>
    %47 = vector.extract_strided_slice %34 {offsets = [0, 128], sizes = [32, 128], strides = [1, 1]} : vector<32x384xf32> to vector<32x128xf32>
    %48 = vector.extract_strided_slice %34 {offsets = [0, 256], sizes = [32, 128], strides = [1, 1]} : vector<32x384xf32> to vector<32x128xf32>
    %c1_i32_12 = arith.constant 1 : i32
    %49 = tpu.dynamic_rotate %46 by %c1_i32_12 dim 0 : vector<32x128xf32>, i32 -> vector<32x128xf32>
    %50 = vector.broadcast %40 : vector<32x1xf32> to vector<32x128xf32>
    %51 = arith.mulf %49, %50 : vector<32x128xf32>
    %52 = arith.addf %47, %51 : vector<32x128xf32>
    %c31_i32 = arith.constant 31 : i32
    %53 = tpu.dynamic_rotate %48 by %c31_i32 dim 0 : vector<32x128xf32>, i32 -> vector<32x128xf32>
    %54 = vector.broadcast %45 : vector<32x1xf32> to vector<32x128xf32>
    %55 = arith.mulf %53, %54 : vector<32x128xf32>
    %56 = arith.addf %52, %55 : vector<32x128xf32>
    %c0_13 = arith.constant 0 : index
    %c0_14 = arith.constant 0 : index
    %57 = vector.load %arg6[%c0_13, %c0_14] : memref<1x128xf32, #tpu.memory_space<vmem>>, vector<1x128xf32>
    %58 = vector.broadcast %57 : vector<1x128xf32> to vector<32x128xf32>
    %59 = arith.addf %56, %58 : vector<32x128xf32>
    %cst_15 = arith.constant 0.000000e+00 : f32
    %60 = vector.broadcast %cst_15 : f32 to vector<32x128xf32>
    %61 = arith.maximumf %59, %60 : vector<32x128xf32>
    %c0_16 = arith.constant 0 : index
    %c0_17 = arith.constant 0 : index
    %62 = vector.load %arg7[%c0_16, %c0_17] : memref<128x128xf32, #tpu.memory_space<vmem>>, vector<128x128xf32>
    %cst_18 = arith.constant dense<0.000000e+00> : vector<32x128xf32>
    %63 = tpu.matmul %61, %62, %cst_18 {dimension_numbers = #tpu.dot_dimension_numbers<[1], [0], [0], [1], [0, 0, 1, 1], [], []>} : vector<32x128xf32>, vector<128x128xf32>, vector<32x128xf32> -> vector<32x128xf32>
    %c8_i32_19 = arith.constant 8 : i32
    %64 = arith.addi %1, %c8_i32_19 : i32
    %c0_20 = arith.constant 0 : index
    %65 = arith.index_cast %64 : i32 to index
    %c0_21 = arith.constant 0 : index
    %66 = vector.load %arg2[%c0_20, %65, %c0_21] : memref<1x80x128xf32, #tpu.memory_space<vmem>>, vector<1x32x128xf32>
    %67 = vector.shape_cast %66 : vector<1x32x128xf32> to vector<32x128xf32>
    %c0_22 = arith.constant 0 : index
    %c0_23 = arith.constant 0 : index
    %68 = vector.load %arg8[%c0_22, %c0_23] : memref<1x128xf32, #tpu.memory_space<vmem>>, vector<1x128xf32>
    %69 = vector.broadcast %68 : vector<1x128xf32> to vector<32x128xf32>
    %70 = arith.addf %63, %69 : vector<32x128xf32>
    %71 = arith.addf %70, %67 : vector<32x128xf32>
    %cst_24 = arith.constant 0.000000e+00 : f32
    %72 = vector.broadcast %cst_24 : f32 to vector<32x128xf32>
    %73 = arith.maximumf %71, %72 : vector<32x128xf32>
    %c0_25 = arith.constant 0 : index
    %c0_26 = arith.constant 0 : index
    %c0_27 = arith.constant 0 : index
    %74 = vector.load %arg9[%c0_25, %c0_26, %c0_27] : memref<1x32x128xf32, #tpu.memory_space<vmem>>, vector<1x32x128xf32>
    %75 = vector.shape_cast %74 : vector<1x32x128xf32> to vector<32x128xf32>
    %76 = vector.shape_cast %73 : vector<32x128xf32> to vector<1x32x128xf32>
    tpu.vector_store %arg9[%c0_25, %c0_26, %c0_27], %76 {strides = array<i32>} : memref<1x32x128xf32, #tpu.memory_space<vmem>>, vector<1x32x128xf32>,
    return
  }
  func.func @transform_0(%arg0: i32, %arg1: i32) -> (i32, i32, i32) {
    %c0_i32 = arith.constant 0 : i32
    %c0_i32_0 = arith.constant 0 : i32
    %c0_i32_1 = arith.constant 0 : i32
    return %arg0, %c0_i32, %c0_i32_0 : i32, i32, i32
  }
  func.func @transform_1(%arg0: i32, %arg1: i32) -> (i32, i32) {
    %c0_i32 = arith.constant 0 : i32
    %c0_i32_0 = arith.constant 0 : i32
    %c0_i32_1 = arith.constant 0 : i32
    return %c0_i32, %c0_i32_0 : i32, i32
  }
  func.func @transform_2(%arg0: i32, %arg1: i32) -> (i32, i32) {
    %c0_i32 = arith.constant 0 : i32
    %c0_i32_0 = arith.constant 0 : i32
    %c0_i32_1 = arith.constant 0 : i32
    return %c0_i32, %c0_i32_0 : i32, i32
  }
  func.func @transform_3(%arg0: i32, %arg1: i32) -> (i32, i32) {
    %c0_i32 = arith.constant 0 : i32
    %c0_i32_0 = arith.constant 0 : i32
    %c0_i32_1 = arith.constant 0 : i32
    return %c0_i32, %c0_i32_0 : i32, i32
  }
  func.func @transform_4(%arg0: i32, %arg1: i32) -> (i32, i32) {
    %c0_i32 = arith.constant 0 : i32
    %c0_i32_0 = arith.constant 0 : i32
    %c0_i32_1 = arith.constant 0 : i32
    return %c0_i32, %c0_i32_0 : i32, i32
  }
  func.func @transform_5(%arg0: i32, %arg1: i32) -> (i32, i32) {
    %c0_i32 = arith.constant 0 : i32
    %c0_i32_0 = arith.constant 0 : i32
    %c0_i32_1 = arith.constant 0 : i32
    return %c0_i32, %c0_i32_0 : i32, i32
  }
  func.func @transform_6(%arg0: i32, %arg1: i32) -> (i32, i32) {
    %c0_i32 = arith.constant 0 : i32
    %c0_i32_0 = arith.constant 0 : i32
    %c0_i32_1 = arith.constant 0 : i32
    return %c0_i32, %c0_i32_0 : i32, i32
  }
  func.func @transform_7(%arg0: i32, %arg1: i32) -> (i32, i32, i32) {
    %c0_i32 = arith.constant 0 : i32
    %c0_i32_0 = arith.constant 0 : i32
    return %arg0, %arg1, %c0_i32 : i32, i32, i32
  }
}

</mosaic_0001>

<bundles_post_ra>
// kernel: bottleneck_pallas.1
= control target key start
LH: loop header
LB: loop body
LE: loop exit
PB: predicated region body
PF: predicated region fallthrough
CT: control target
= control target key end

     0   :  { %12 = vsyncpa [#allocation3], 0  ;;  %s2055_s0 = inlined_call_operand.vmem [shape: f32[2,80,128], index: 0, kind: input, shape index: {}]   ;;  %s2056_s1 = inlined_call_operand.vmem [shape: f32[128,128], index: 1, kind: input, shape index: {}]   ;;  %s2057_s2 = inlined_call_operand.vmem [shape: f32[1,128], index: 2, kind: input, shape index: {}]   ;;  %s2058_s3 = inlined_call_operand.vmem [shape: f32[384,384], index: 3, kind: input, shape index: {}]   ;;  %s2059_s4 = inlined_call_operand.vmem [shape: f32[1,128], index: 4, kind: input, shape index: {}]   ;;  %s2060_s5 = inlined_call_operand.vmem [shape: f32[128,128], index: 5, kind: input, shape index: {}]   ;;  %s2061_s6 = inlined_call_operand.vmem [shape: f32[1,128], index: 6, kind: input, shape index: {}]   ;;  %s2062_s7 = inlined_call_operand.hbm [shape: f32[2,64,128], index: 7, kind: output, shape index: {}]  }
   0x1   :  { %14 = vsyncpa [#allocation3 + $0x1], 0  ;;  %s1281_s24 = smov 0   ;;  %s1283_s25 = smov 0  }
   0x2   :  { %s1285_s26 = smov 0   ;;  %s1287_s27 = smov 0  }
   0x3   :  { %s1289_s28 = smov 0   ;;  %s1291_s29 = smov 0  }
   0x4   :  { %s1293_s30 = smov 0   ;;  %s1295_s8 = smov 0  }
   0x5 LB: > { %2066 = sst [smem:[#allocation5_spill]] %s1231_s30  ;;  %s1041_s9 = sadd.s32 4294967295, %s1235_s8   ;;  %s1235_s8 = sphi %s1295_s8, %s20_s8   ;;  %s1231_s30 = sphi %s1293_s30, %s2073_s30   ;;  %s1227_s29 = sphi %s1291_s29, %s2078_s29   ;;  %s1223_s28 = sphi %s1289_s28, %s2071_s28   ;;  %s1219_s27 = sphi %s1287_s27, %s2077_s27   ;;  %s1215_s26 = sphi %s1285_s26, %s2076_s26   ;;  %s1211_s25 = sphi %s1283_s25, %s2075_s25   ;;  %s1207_s24 = sphi %s1281_s24, %s2074_s24  }
   0x6   : > { %s1042_s10 = sadd.s32 4294967294, %s1235_s8   ;;  %s29_s11 = sadd.s32 1, %s1227_s29 }
   0x7   : > { %p30_p0 = scmp.ge.s32.totalorder %s29_s11, 2  ;;  %s32_s12 = sadd.s32 1, %s1231_s30 }
   0x8   : > { %p203_p1 = scmp.ne.s32.totalorder %s1215_s26, %s1211_s25  ;;  %p204_p2 = scmp.eq.s32.totalorder %s1041_s9, 3 }
   0x9   : > { %s2080_s11 = smov (%p30_p0, %s29_s11), 0  ;;  %s2082_s12 = smov (!%p30_p0, %s32_s12), %s1231_s30 }
   0xa   : > { %2067 = sst [smem:[#allocation6_spill]] %s2080_s11  ;;  %s189_s13 = ssub.s32 %s1227_s29, %s2080_s11 }
   0xb   : > { %p1332_p3 = por %p204_p2, %p203_p1  ;;  %p34_p4 = scmp.ge.s32.totalorder %s2082_s12, 2 }
   0xc   : > { %p209_p5 = scmp.ne.s32.totalorder %s1211_s25, %s1207_s24  ;;  %p210_p6 = scmp.eq.s32.totalorder %s1042_s10, 3 }
   0xd   : > { %p1045_p7 = scmp.ge.s32.totalorder %s1235_s8, 1  ;;  %s2084_s12 = smov (%p34_p4, %s2082_s12), 0 }
   0xe   : > { %2069 = sst [smem:[#allocation7_spill]] %s2084_s12  ;;  %p1341_p8 = por %p210_p6, %p209_p5 }
   0xf   : > { %p254_p9 = scmp.lt.s32.totalorder %s1235_s8, 5  ;;  %s188_s16 = ssub.s32 %s1231_s30, %s2084_s12 }
  0x10   : > { %s193_s17 = sadd.s32 1, %s1215_s26  ;;  %s190_s18 = sor.u32 %s189_s13, %s188_s16 }
  0x11   : > { %p255_p10 = pnand %p1045_p7, %p254_p9  ;;  %p191_p11 = scmp.eq.s32.totalorder %s190_s18, 0 }
  0x12   : > { %p286_p12 = scmp.lt.s32.totalorder (!%p255_p10), %s1223_s28, 1  ;;  %s1048_s11 = sshll.u32 (!%p255_p10), %s1219_s27, 5 }
  0x13   : > { %s1350_s19 = scalar_select %p191_p11, %s1215_s26, %s193_s17  }
  0x14   : > { %258 = sbr.rel (%p255_p10) target bundleno = 578 (0x242), region = 48  ;;  %p368_p13 = scmp.eq.s32.totalorder (!%p255_p10), %s1219_s27, 0 }
  0x15   : > { %p384_p0 = scmp.eq.s32.totalorder (!%p255_p10), %s1219_s27, 1  ;;  %s283_s18 = sand.u32 (!%p255_p10), 1, %s1211_s25  }
  0x16   : > { %s1057_s22 = sshll.u32 (!%p255_p10), %s1219_s27, 2  ;;  %s1058_s10 = sshll.u32 (!%p255_p10), %s1223_s28, 3 }
  0x17   : > { %s954_s13 = sadd.s32 (!%p255_p10), %s1058_s10, %s1057_s22  ;;  %s1161_s10 = scalar_lea.hbm (!%p255_p10), %s2062_s7, 128 }
  0x19   : > { %v315_v0 = vld [vmem:[%s2056_s1 + $0x78] sm:$0xff]  ;;  %v314_v1 = vld [vmem:[%s2056_s1 + $0x70] sm:$0xff]  ;;  %v313_v2 = vld [vmem:[%s2056_s1 + $0x68] sm:$0xff]  ;;  %s287_s17 = scalar_select %p286_p12, %s1223_s28, 1 }
  0x1a   : > { %320 = vmatpush.msra.mxu0 %v315_v0  ;;  %v312_v3 = vld [vmem:[%s2056_s1 + $0x60] sm:$0xff]  ;;  %v311_v4 = vld [vmem:[%s2056_s1 + $0x58] sm:$0xff]  ;;  %v310_v5 = vld [vmem:[%s2056_s1 + $0x50] sm:$0xff]  ;;  %s375_s16 = scalar_select %p368_p13, 1, 0 }
  0x1b   : > { %v309_v6 = vld [vmem:[%s2056_s1 + $0x48] sm:$0xff]  ;;  %v308_v7 = vld [vmem:[%s2056_s1 + $0x40] sm:$0xff]  ;;  %v307_v8 = vld [vmem:[%s2056_s1 + $0x38] sm:$0xff]  ;;  %s1062_s23 = smul.u32 80, %s287_s17  ;;  %s943_s28 = scalar_lea.sflag [#allocation3], %s283_s18 }
  0x1c   : > { %321 = vmatpush.msra.mxu0 %v314_v1  ;;  %v306_v9 = vld [vmem:[%s2056_s1 + $0x30] sm:$0xff]  ;;  %v305_v10 = vld [vmem:[%s2056_s1 + $0x28] sm:$0xff]  ;;  %v304_v11 = vld [vmem:[%s2056_s1 + $0x20] sm:$0xff]  ;;  %s391_s17 = scalar_select %p384_p0, 1, 0 }
  0x1d   : > { %v303_v12 = vld [vmem:[%s2056_s1 + $0x18] sm:$0xff]  ;;  %s290_s20 = scalar_lea.vmem %s2055_s0, %s1062_s23  ;;  %v302_v13 = vld [vmem:[%s2056_s1 + $0x10] sm:$0xff]  ;;  %v301_v14 = vld [vmem:[%s2056_s1 + $0x8] sm:$0xff] }
  0x1e   : > { %322 = vmatpush.msra.mxu0 %v313_v2  ;;  %s1403_s9 = scalar_lea.vmem %s290_s20, %s1048_s11  ;;  %v300_v15 = vld [vmem:[%s2056_s1] sm:$0xff]  ;;  %v463_v18 = vld [vmem:[%s2058_s3 + $0x168] sm:$0xff]  ;;  %v465_v19 = vld [vmem:[%s2058_s3 + $0x178] sm:$0xff]  ;;  %s1046_s20 = sshll.u32 %s283_s18, 5 }
  0x1f   : > { %v294_v16 = vld [vmem:[%s1403_s9] sm:$0xff]  ;;  %v295_v17 = vld [vmem:[%s1403_s9 + $0x8] sm:$0xff]  ;;  %v460_v20 = vld [vmem:[%s2058_s3 + $0x150] sm:$0xff]  ;;  %562 = vmatpush.msra.mxu1 %v463_v18  ;;  %s285_s21 = scalar_lea.vmem [#allocation2], %s1046_s20 }
  0x20   : > { %323 = vmatpush.msra.mxu0 %v312_v3  ;;  %v462_v21 = vld [vmem:[%s2058_s3 + $0x160] sm:$0xff]  ;;  %v457_v22 = vld [vmem:[%s2058_s3 + $0x138] sm:$0xff]  ;;  %v459_v23 = vld [vmem:[%s2058_s3 + $0x148] sm:$0xff]  ;;  %s957_s11 = sshll.u32 %s285_s21, 4  ;;  %s958_s11 = int_to_ptr.vmem [resolvable:$true] %s957_s11 }
  0x21   : > { %v511_v24 = vld [vmem:[%s2058_s3 + $0x2e8] sm:$0xff]  ;;  %563 = vmatpush.msra.mxu1 %v460_v20  ;;  %v508_v25 = vld [vmem:[%s2058_s3 + $0x2d0] sm:$0xff]  ;;  %v454_v26 = vld [vmem:[%s2058_s3 + $0x120] sm:$0xff] }
  0x22   : > { %324 = vmatpush.msra.mxu0 %v311_v4  ;;  %591 = vmatpush.msra.mxu2 %v511_v24  ;;  %v456_v27 = vld [vmem:[%s2058_s3 + $0x130] sm:$0xff]  ;;  %v505_v29 = vld [vmem:[%s2058_s3 + $0x2b8] sm:$0xff]  ;;  %v451_v30 = vld [vmem:[%s2058_s3 + $0x108] sm:$0xff] }
  0x23   : > { %v296_v28 = vld [vmem:[%s1403_s9 + $0x10] sm:$0xff]  ;;  %564 = vmatpush.msra.mxu1 %v457_v22  ;;  %v453_v31 = vld [vmem:[%s2058_s3 + $0x118] sm:$0xff]  ;;  %v502_v32 = vld [vmem:[%s2058_s3 + $0x2a0] sm:$0xff] }
  0x24   : > { %325 = vmatpush.msra.mxu0 %v310_v5  ;;  %592 = vmatpush.msra.mxu2 %v508_v25  ;;  %v559_v33 = vld [vmem:[%s2058_s3 + $0x468] sm:$0xff]  ;;  %v448_v34 = vld [vmem:[%s2058_s3 + $0xf0] sm:$0xff]  ;;  %v450_v35 = vld [vmem:[%s2058_s3 + $0x100] sm:$0xff] }
  0x25   : > { %565 = vmatpush.msra.mxu1 %v454_v26  ;;  %v499_v36 = vld [vmem:[%s2058_s3 + $0x288] sm:$0xff]  ;;  %v556_v37 = vld [vmem:[%s2058_s3 + $0x450] sm:$0xff]  ;;  %v445_v38 = vld [vmem:[%s2058_s3 + $0xd8] sm:$0xff]  ;;  %620 = vmatpush.msra.mxu3 %v559_v33 }
  0x26   : > { %326 = vmatpush.msra.mxu0 %v309_v6  ;;  %593 = vmatpush.msra.mxu2 %v505_v29  ;;  %v447_v39 = vld [vmem:[%s2058_s3 + $0xe8] sm:$0xff]  ;;  %v496_v40 = vld [vmem:[%s2058_s3 + $0x270] sm:$0xff]  ;;  %v553_v41 = vld [vmem:[%s2058_s3 + $0x438] sm:$0xff] }
  0x27   : > { %566 = vmatpush.msra.mxu1 %v451_v30  ;;  %v442_v42 = vld [vmem:[%s2058_s3 + $0xc0] sm:$0xff]  ;;  %v444_v43 = vld [vmem:[%s2058_s3 + $0xd0] sm:$0xff]  ;;  %621 = vmatpush.msra.mxu3 %v556_v37  ;;  %v297_v44 = vld [vmem:[%s1403_s9 + $0x18] sm:$0xff] }
  0x28   : > { %327 = vmatpush.msra.mxu0 %v308_v7  ;;  %594 = vmatpush.msra.mxu2 %v502_v32  ;;  %v493_v45 = vld [vmem:[%s2058_s3 + $0x258] sm:$0xff]  ;;  %v439_v46 = vld [vmem:[%s2058_s3 + $0xa8] sm:$0xff]  ;;  %v490_v48 = vld [vmem:[%s2058_s3 + $0x240] sm:$0xff] }
  0x29   : > { %567 = vmatpush.msra.mxu1 %v448_v34  ;;  %v441_v47 = vld [vmem:[%s2058_s3 + $0xb8] sm:$0xff]  ;;  %622 = vmatpush.msra.mxu3 %v553_v41  ;;  %v550_v49 = vld [vmem:[%s2058_s3 + $0x420] sm:$0xff]  ;;  %v436_v50 = vld [vmem:[%s2058_s3 + $0x90] sm:$0xff] }
  0x2a   : > { %328 = vmatpush.msra.mxu0 %v307_v8  ;;  %595 = vmatpush.msra.mxu2 %v499_v36  ;;  %v438_v51 = vld [vmem:[%s2058_s3 + $0xa0] sm:$0xff]  ;;  %v487_v52 = vld [vmem:[%s2058_s3 + $0x228] sm:$0xff]  ;;  %v433_v54 = vld [vmem:[%s2058_s3 + $0x78] sm:$0xff] }
  0x2b   : > { %568 = vmatpush.msra.mxu1 %v445_v38  ;;  %v547_v53 = vld [vmem:[%s2058_s3 + $0x408] sm:$0xff]  ;;  %623 = vmatpush.msra.mxu3 %v550_v49  ;;  %v430_v56 = vld [vmem:[%s2058_s3 + $0x60] sm:$0xff]  ;;  %v432_v57 = vld [vmem:[%s2058_s3 + $0x70] sm:$0xff] }
  0x2c   : > { %329 = vmatpush.msra.mxu0 %v306_v9  ;;  %596 = vmatpush.msra.mxu2 %v496_v40  ;;  %v435_v55 = vld [vmem:[%s2058_s3 + $0x88] sm:$0xff]  ;;  %v298_v58 = vld [vmem:[%s1403_s9 + $0x20] sm:$0xff]  ;;  %v484_v61 = vld [vmem:[%s2058_s3 + $0x210] sm:$0xff] }
  0x2d   : > { %569 = vmatpush.msra.mxu1 %v442_v42  ;;  %624 = vmatpush.msra.mxu3 %v547_v53  ;;  %v299_v59 = vld [vmem:[%s1403_s9 + $0x28] sm:$0xff]  ;;  %v544_v62 = vld [vmem:[%s2058_s3 + $0x3f0] sm:$0xff]  ;;  %v429_v63 = vld [vmem:[%s2058_s3 + $0x58] sm:$0xff] }
  0x2e   : > { %330 = vmatpush.msra.mxu0 %v305_v10  ;;  %597 = vmatpush.msra.mxu2 %v493_v45  ;;  %v427_v60 = vld [vmem:[%s2058_s3 + $0x48] sm:$0xff]  ;;  %v424_v0 = vld [vmem:[%s2058_s3 + $0x30] sm:$0xff]  ;;  %v481_v1 = vld [vmem:[%s2058_s3 + $0x1f8] sm:$0xff]  ;;  %v376_v45 = vstv %s375_s16 }
  0x2f   : > { %570 = vmatpush.msra.mxu1 %v439_v46  ;;  %625 = vmatpush.msra.mxu3 %v544_v62  ;;  %v541_v2 = vld [vmem:[%s2058_s3 + $0x3d8] sm:$0xff]  ;;  %v426_v3 = vld [vmem:[%s2058_s3 + $0x40] sm:$0xff]  ;;  %v423_v7 = vld [vmem:[%s2058_s3 + $0x28] sm:$0xff]  ;;  %vm377_vm0 = vcmp.eq.s32.totalorder %v376_v45, 1 }
  0x30   : > { %331 = vmatpush.msra.mxu0 %v304_v11  ;;  %598 = vmatpush.msra.mxu2 %v490_v48  ;;  %v421_v4 = vld [vmem:[%s2058_s3 + $0x18] sm:$0xff]  ;;  %v478_v5 = vld [vmem:[%s2058_s3 + $0x1e0] sm:$0xff]  ;;  %v475_v9 = vld [vmem:[%s2058_s3 + $0x1c8] sm:$0xff] }
  0x31   : > { %571 = vmatpush.msra.mxu1 %v436_v50  ;;  %626 = vmatpush.msra.mxu3 %v541_v2  ;;  %v538_v6 = vld [vmem:[%s2058_s3 + $0x3c0] sm:$0xff]  ;;  %v535_v10 = vld [vmem:[%s2058_s3 + $0x3a8] sm:$0xff]  ;;  %v420_v11 = vld [vmem:[%s2058_s3 + $0x10] sm:$0xff] }
  0x32   : > { %332 = vmatpush.msra.mxu0 %v303_v12  ;;  %599 = vmatpush.msra.mxu2 %v487_v52  ;;  %v418_v8 = vld [vmem:[%s2058_s3] sm:$0xff]  ;;  %v472_v12 = vld [vmem:[%s2058_s3 + $0x1b0] sm:$0xff]  ;;  %v523_v22 = vld [vmem:[%s2058_s3 + $0x348] sm:$0xff] }
  0x33   : > { %572 = vmatpush.msra.mxu1 %v433_v54  ;;  %627 = vmatpush.msra.mxu3 %v538_v6  ;;  %v466_v18 = vld [vmem:[%s2058_s3 + $0x180] sm:$0xff]  ;;  %v509_v24 = vld [vmem:[%s2058_s3 + $0x2d8] sm:$0xff]  ;;  %v520_v25 = vld [vmem:[%s2058_s3 + $0x330] sm:$0xff] }
  0x34   : > { %333 = vmatpush.msra.mxu0 %v302_v13  ;;  %600 = vmatpush.msra.mxu2 %v484_v61  ;;  %v532_v13 = vld [vmem:[%s2058_s3 + $0x390] sm:$0xff]  ;;  %v458_v20 = vld [vmem:[%s2058_s3 + $0x140] sm:$0xff]  ;;  %v449_v29 = vld [vmem:[%s2058_s3 + $0xf8] sm:$0xff] }
  0x35   : > { %573 = vmatpush.msra.mxu1 %v430_v56  ;;  %628 = vmatpush.msra.mxu3 %v535_v10  ;;  %v452_v26 = vld [vmem:[%s2058_s3 + $0x110] sm:$0xff]  ;;  %v503_v30 = vld [vmem:[%s2058_s3 + $0x2a8] sm:$0xff]  ;;  %v446_v32 = vld [vmem:[%s2058_s3 + $0xe0] sm:$0xff] }
  0x36   : > { %334 = vmatpush.msra.mxu0 %v301_v14  ;;  %601 = vmatpush.msra.mxu2 %v481_v1  ;;  %v464_v14 = vld [vmem:[%s2058_s3 + $0x170] sm:$0xff]  ;;  %v443_v34 = vld [vmem:[%s2058_s3 + $0xc8] sm:$0xff]  ;;  %v494_v38 = vld [vmem:[%s2058_s3 + $0x260] sm:$0xff] }
  0x37   : > { %574 = vmatpush.msra.mxu1 %v427_v60  ;;  %629 = vmatpush.msra.mxu3 %v532_v13  ;;  %v500_v33 = vld [vmem:[%s2058_s3 + $0x290] sm:$0xff]  ;;  %v557_v40 = vld [vmem:[%s2058_s3 + $0x458] sm:$0xff]  ;;  %v491_v41 = vld [vmem:[%s2058_s3 + $0x248] sm:$0xff] }
  0x38   : > { %335 = vmatpush.msra.mxu0 %v300_v15  ;;  %602 = vmatpush.msra.mxu2 %v478_v5  ;;  %v469_v15 = vld [vmem:[%s2058_s3 + $0x198] sm:$0xff]  ;;  %v440_v36 = vld [vmem:[%s2058_s3 + $0xb0] sm:$0xff]  ;;  %v434_v42 = vld [vmem:[%s2058_s3 + $0x80] sm:$0xff] }
  0x39   : > { %336 = vmatmul.f32.vlgmr.msra.gmra.mxu0 %v294_v16  ;;  %575 = vmatpush.msra.mxu1 %v424_v0  ;;  %v529_v16 = vld [vmem:[%s2058_s3 + $0x378] sm:$0xff]  ;;  %v560_v37 = vld [vmem:[%s2058_s3 + $0x470] sm:$0xff]  ;;  %v551_v48 = vld [vmem:[%s2058_s3 + $0x428] sm:$0xff] }
  0x3a   : > { %736 = vmatpush.msrb.mxu0 %v465_v19  ;;  %603 = vmatpush.msra.mxu2 %v475_v9  ;;  %v526_v19 = vld [vmem:[%s2058_s3 + $0x360] sm:$0xff]  ;;  %v488_v46 = vld [vmem:[%s2058_s3 + $0x230] sm:$0xff]  ;;  %v485_v49 = vld [vmem:[%s2058_s3 + $0x218] sm:$0xff] }
  0x3b   : > { %576 = vmatpush.msra.mxu1 %v421_v4  ;;  %630 = vmatpush.msra.mxu3 %v529_v16  ;;  %v428_v50 = vld [vmem:[%s2058_s3 + $0x50] sm:$0xff]  ;;  %v482_v54 = vld [vmem:[%s2058_s3 + $0x200] sm:$0xff]  ;;  %v545_v56 = vld [vmem:[%s2058_s3 + $0x3f8] sm:$0xff] }
  0x3c   : > { %737 = vmatpush.msrb.mxu0 %v462_v21  ;;  %604 = vmatpush.msra.mxu2 %v472_v12  ;;  %v512_v21 = vld [vmem:[%s2058_s3 + $0x2f0] sm:$0xff]  ;;  %v479_v60 = vld [vmem:[%s2058_s3 + $0x1e8] sm:$0xff]  ;;  %v422_v61 = vld [vmem:[%s2058_s3 + $0x20] sm:$0xff] }
  0x3d   : > { %577 = vmatpush.msra.mxu1 %v418_v8  ;;  %631 = vmatpush.msra.mxu3 %v526_v19  ;;  %v542_v62 = vld [vmem:[%s2058_s3 + $0x3e0] sm:$0xff]  ;;  %v476_v0 = vld [vmem:[%s2058_s3 + $0x1d0] sm:$0xff]  ;;  %v419_v1 = vld [vmem:[%s2058_s3 + $0x8] sm:$0xff] }
  0x3e   : > { %738 = vmatpush.msrb.mxu0 %v459_v23  ;;  %605 = vmatpush.msra.mxu2 %v469_v15  ;;  %v455_v23 = vld [vmem:[%s2058_s3 + $0x128] sm:$0xff]  ;;  %v536_v4 = vld [vmem:[%s2058_s3 + $0x3b0] sm:$0xff]  ;;  %v513_v5 = vld [vmem:[%s2058_s3 + $0x2f8] sm:$0xff] }
  0x3f   : > { %649 = vmatpush.msrb.mxu1 %v464_v14  ;;  %632 = vmatpush.msra.mxu3 %v523_v22  ;;  %v539_v2 = vld [vmem:[%s2058_s3 + $0x3c8] sm:$0xff]  ;;  %v470_v8 = vld [vmem:[%s2058_s3 + $0x1a0] sm:$0xff]  ;;  %v533_v9 = vld [vmem:[%s2058_s3 + $0x398] sm:$0xff] }
  0x40   : > { %739 = vmatpush.msrb.mxu0 %v456_v27  ;;  %606 = vmatpush.msra.mxu2 %v466_v18  ;;  %v506_v27 = vld [vmem:[%s2058_s3 + $0x2c0] sm:$0xff]  ;;  %v467_v12 = vld [vmem:[%s2058_s3 + $0x188] sm:$0xff]  ;;  %v561_v15 = vld [vmem:[%s2058_s3 + $0x478] sm:$0xff] }
  0x41   : > { %339 = vmatmul.f32.gmra.mxu0 %v295_v17  ;;  %v461_v17 = vld [vmem:[%s2058_s3 + $0x158] sm:$0xff]  ;;  %633 = vmatpush.msra.mxu3 %v520_v25  ;;  %v510_v10 = vld [vmem:[%s2058_s3 + $0x2e0] sm:$0xff]  ;;  %v507_v14 = vld [vmem:[%s2058_s3 + $0x2c8] sm:$0xff] }
  0x42   : > { %740 = vmatpush.msrb.mxu0 %v453_v31  ;;  %650 = vmatpush.msrb.mxu1 %v461_v17  ;;  %v514_v31 = vld [vmem:[%s2058_s3 + $0x300] sm:$0xff]  ;;  %v527_v16 = vld [vmem:[%s2058_s3 + $0x368] sm:$0xff]  ;;  %v504_v17 = vld [vmem:[%s2058_s3 + $0x2b0] sm:$0xff] }
  0x43   : > { %678 = vmatpush.msrb.mxu2 %v512_v21  ;;  %v530_v13 = vld [vmem:[%s2058_s3 + $0x380] sm:$0xff]  ;;  %v524_v19 = vld [vmem:[%s2058_s3 + $0x350] sm:$0xff]  ;;  %v555_v22 = vld [vmem:[%s2058_s3 + $0x448] sm:$0xff] }
  0x44   : > { %741 = vmatpush.msrb.mxu0 %v450_v35  ;;  %651 = vmatpush.msrb.mxu1 %v458_v20  ;;  %v497_v35 = vld [vmem:[%s2058_s3 + $0x278] sm:$0xff]  ;;  %v558_v18 = vld [vmem:[%s2058_s3 + $0x460] sm:$0xff] }
  0x45   : > { %679 = vmatpush.msrb.mxu2 %v509_v24  ;;  %v501_v20 = vld [vmem:[%s2058_s3 + $0x298] sm:$0xff]  ;;  %v498_v25 = vld [vmem:[%s2058_s3 + $0x280] sm:$0xff] }
  0x46   : > { %742 = vmatpush.msrb.mxu0 %v447_v39  ;;  %652 = vmatpush.msrb.mxu1 %v455_v23  ;;  %v437_v39 = vld [vmem:[%s2058_s3 + $0x98] sm:$0xff]  ;;  %v534_v45 = vld [vmem:[%s2058_s3 + $0x3a0] sm:$0xff] }
  0x47   : > { %680 = vmatpush.msrb.mxu2 %v506_v27  ;;  %v521_v24 = vld [vmem:[%s2058_s3 + $0x338] sm:$0xff]  ;;  %v552_v27 = vld [vmem:[%s2058_s3 + $0x430] sm:$0xff] }
  0x48   : > { %743 = vmatpush.msrb.mxu0 %v444_v43  ;;  %653 = vmatpush.msrb.mxu1 %v452_v26  ;;  %v554_v43 = vld [vmem:[%s2058_s3 + $0x440] sm:$0xff] }
  0x49   : > { %342 = vmatmul.f32.gmra.mxu0 %v296_v28  ;;  %v517_v28 = vld [vmem:[%s2058_s3 + $0x318] sm:$0xff]  ;;  %681 = vmatpush.msrb.mxu2 %v503_v30 }
  0x4a   : > { %744 = vmatpush.msrb.mxu0 %v441_v47  ;;  %654 = vmatpush.msrb.mxu1 %v449_v29  ;;  %v431_v47 = vld [vmem:[%s2058_s3 + $0x68] sm:$0xff]  ;;  %v549_v30 = vld [vmem:[%s2058_s3 + $0x418] sm:$0xff] }
  0x4b   : > { %634 = vmatpush.msra.mxu3 %v517_v28  ;;  %682 = vmatpush.msrb.mxu2 %v500_v33  ;;  %v518_v28 = vld [vmem:[%s2058_s3 + $0x320] sm:$0xff]  ;;  %v495_v29 = vld [vmem:[%s2058_s3 + $0x268] sm:$0xff] }
  0x4c   : > { %745 = vmatpush.msrb.mxu0 %v438_v51  ;;  %655 = vmatpush.msrb.mxu1 %v446_v32  ;;  %v548_v51 = vld [vmem:[%s2058_s3 + $0x410] sm:$0xff]  ;;  %v546_v33 = vld [vmem:[%s2058_s3 + $0x400] sm:$0xff] }
  0x4d   : > { %635 = vmatpush.msra.mxu3 %v514_v31  ;;  %683 = vmatpush.msrb.mxu2 %v497_v35  ;;  %v515_v31 = vld [vmem:[%s2058_s3 + $0x308] sm:$0xff]  ;;  %v492_v32 = vld [vmem:[%s2058_s3 + $0x250] sm:$0xff] }
  0x4e   : > { %746 = vmatpush.msrb.mxu0 %v435_v55  ;;  %656 = vmatpush.msrb.mxu1 %v443_v34  ;;  %v425_v55 = vld [vmem:[%s2058_s3 + $0x38] sm:$0xff] }
  0x4f   : > { %707 = vmatpush.msrb.mxu3 %v560_v37  ;;  %684 = vmatpush.msrb.mxu2 %v494_v38  ;;  %v543_v37 = vld [vmem:[%s2058_s3 + $0x3e8] sm:$0xff] }
  0x50   : > { %747 = vmatpush.msrb.mxu0 %v432_v57  ;;  %657 = vmatpush.msrb.mxu1 %v440_v36  ;;  %v1237_v57 = vmov 1.0   ;;  %v489_v36 = vld [vmem:[%s2058_s3 + $0x238] sm:$0xff] }
  0x51   : > { %345 = vmatmul.f32.gmra.mxu0 %v297_v44  ;;  %708 = vmatpush.msrb.mxu3 %v557_v40  ;;  %v1676_v44 = vld [vmem:[%s2057_s2] ss:$0 sm:$0xff]  ;;  %v540_v40 = vld [vmem:[%s2058_s3 + $0x3d0] sm:$0xff] }
  0x52   : > { %748 = vmatpush.msrb.mxu0 %v429_v63  ;;  %658 = vmatpush.msrb.mxu1 %v437_v39  ;;  %v486_v39 = vld [vmem:[%s2058_s3 + $0x220] sm:$0xff] }
  0x53   : > { %685 = vmatpush.msrb.mxu2 %v491_v41  ;;  %709 = vmatpush.msrb.mxu3 %v554_v43  ;;  %v483_v41 = vld [vmem:[%s2058_s3 + $0x208] sm:$0xff]  ;;  %v480_v43 = vld [vmem:[%s2058_s3 + $0x1f0] sm:$0xff] }
  0x54   : > { %749 = vmatpush.msrb.mxu0 %v426_v3  ;;  %659 = vmatpush.msrb.mxu1 %v434_v42  ;;  %v473_v3 = vld [vmem:[%s2058_s3 + $0x1b8] sm:$0xff] }
  0x55   : > { %686 = vmatpush.msrb.mxu2 %v488_v46  ;;  %710 = vmatpush.msrb.mxu3 %v551_v48  ;;  %v537_v42 = vld [vmem:[%s2058_s3 + $0x3b8] sm:$0xff] }
  0x56   : > { %750 = vmatpush.msrb.mxu0 %v423_v7  ;;  %660 = vmatpush.msrb.mxu1 %v431_v47  ;;  %v477_v48 = vld [vmem:[%s2058_s3 + $0x1d8] sm:$0xff] }
  0x57   : > { %687 = vmatpush.msrb.mxu2 %v485_v49  ;;  %711 = vmatpush.msrb.mxu3 %v548_v51  ;;  %v531_v49 = vld [vmem:[%s2058_s3 + $0x388] sm:$0xff]  ;;  %v474_v51 = vld [vmem:[%s2058_s3 + $0x1c0] sm:$0xff] }
  0x58   : > { %751 = vmatpush.msrb.mxu0 %v420_v11  ;;  %661 = vmatpush.msrb.mxu1 %v428_v50 }
  0x59   : > { %348 = vmatmul.f32.gmra.mxu0 %v298_v58  ;;  %v406_v58 = vsel %vm377_vm0, 0.0, %v1237_v57  ;;  %688 = vmatpush.msrb.mxu2 %v482_v54  ;;  %v471_v54 = vld [vmem:[%s2058_s3 + $0x1a8] sm:$0xff] }
  0x5a   : > { %662 = vmatpush.msrb.mxu1 %v425_v55  ;;  %712 = vmatpush.msrb.mxu3 %v545_v56  ;;  %v525_v55 = vld [vmem:[%s2058_s3 + $0x358] sm:$0xff]  ;;  %v468_v56 = vld [vmem:[%s2058_s3 + $0x190] sm:$0xff] }
  0x5b   : > { %689 = vmatpush.msrb.mxu2 %v479_v60 }
  0x5c   : > { %663 = vmatpush.msrb.mxu1 %v422_v61  ;;  %713 = vmatpush.msrb.mxu3 %v542_v62  ;;  %v519_v61 = vld [vmem:[%s2058_s3 + $0x328] sm:$0xff] }
  0x5d   : > { %690 = vmatpush.msrb.mxu2 %v476_v0  ;;  %v516_v0 = vld [vmem:[%s2058_s3 + $0x310] sm:$0xff] }
  0x5e   : > { %664 = vmatpush.msrb.mxu1 %v419_v1  ;;  %714 = vmatpush.msrb.mxu3 %v539_v2 }
  0x5f   : > { %691 = vmatpush.msrb.mxu2 %v473_v3 }
  0x60   : > { %715 = vmatpush.msrb.mxu3 %v536_v4 }
  0x61   : > { %351 = vmatmul.f32.gmra.mxu0 %v299_v59  ;;  %692 = vmatpush.msrb.mxu2 %v470_v8  ;;  %v361_v8 = vlaneseq }
  0x62   : > { %716 = vmatpush.msrb.mxu3 %v533_v9 }
  0x63   : > { %693 = vmatpush.msrb.mxu2 %v467_v12 }
  0x64   : > { %717 = vmatpush.msrb.mxu3 %v530_v13 }
  0x66   : > { %718 = vmatpush.msrb.mxu3 %v527_v16 }
  0x68   : > { %719 = vmatpush.msrb.mxu3 %v524_v19 }
  0x6a   : > { %720 = vmatpush.msrb.mxu3 %v521_v24 }
  0x6c   : > { %721 = vmatpush.msrb.mxu3 %v518_v28  ;;  %v887_v28 = vld [vmem:[%s2060_s5 + $0x60] sm:$0xff] }
  0x6e   : > { %722 = vmatpush.msrb.mxu3 %v515_v31 }
  0xb6   : > { %v337_v52 = vpop.f32.mrf.mxu0 }
  0xb7   : > { %v338_v53 = vadd.f32 %v1676_v44, %v337_v52  ;;  %v528_v52 = vld [vmem:[%s2058_s3 + $0x370] sm:$0xff] }
  0xb9   : > { %v355_v59 = vmax.f32 %v338_v53, 0.0  ;;  %v392_v53 = vstv %s391_s17  ;;  %s1059_s17 = sshll.u32 %s954_s13, 3 }
  0xba   : > { %vm393_vm1 = vcmp.eq.s32.totalorder %v392_v53, 1  ;;  %s956_s16 = scalar_lea.hbm %s2062_s7, %s1059_s17 }
  0xbb   : > { %v1716_v63 = vmul.f32 %v406_v58, %v355_v59  ;;  %v522_v58 = vld [vmem:[%s2058_s3 + $0x340] sm:$0xff]  ;;  %v411_v62 = vsel %vm393_vm1, 0.0, %v1237_v57  ;;  %s959_s27 = sshll.u32 %s956_s16, 4  ;;  %s960_s27 = int_to_ptr.hbm [resolvable:$true] %s959_s27 }
  0xbc   : > { %s1155_s23 = sshra.s32 %s960_s27, 4  ;;  %s1156_s23 = int_to_ptr.hbm [resolvable:$true] %s1155_s23 }
  0xbd   : > { %578 = vmatmul.f32.vlgmr.msra.gmra.mxu1 %v1716_v63  ;;  %752 = vmatmul.f32.vlgmr.msrb.gmra.mxu0 %v1716_v63  ;;  %s1157_s20 = scalar_lea.hbm %s1156_s23, 32  ;;  %p1162_p5 = scmp.lt.s32.totalorder %s1156_s23, %s2062_s7 }
  0xbe   : > { %v340_v6 = vpop.f32.mrf.mxu0  ;;  %765 = vmatpush.msra.mxu1 %v513_v5  ;;  %p1158_p1 = scmp.ne.s32.totalorder %s1156_s23, %s1157_s20  ;;  %p1163_p6 = scmp.lt.s32.totalorder %s1161_s10, %s1157_s20 }
  0xbf   : > { %v341_v7 = vadd.f32 %v1676_v44, %v340_v6 }
  0xc0   : > { %766 = vmatpush.msra.mxu1 %v510_v10  ;;  %v1898_v10 = vshrl.u32 %v361_v8, 7  ;;  %p1159_p2 = pnand %p1158_p1, %p1332_p3  ;;  %p1164_p7 = por %p1163_p6, %p1162_p5 }
  0xc1   : > { %v1748_v11 = vmax.f32 %v341_v7, 0.0 }
  0xc2   : > { %767 = vmatpush.msra.mxu1 %v507_v14  ;;  %vm833_vm2 = vcmp.lt.s32.totalorder %v1898_v10, 1  ;;  %vm823_vm3 = vcmp.ge.s32.totalorder %v1898_v10, 1  ;;  %vm826_vm4 = vcmp.le.s32.totalorder %v1898_v10, 6  ;;  %vm850_vm5 = vcmp.lt.s32.totalorder %v1898_v10, 7  ;;  %v1140_v10 = vld [vmem:[%s2061_s6] ss:$0 sm:$0xff]  ;;  %p1160_p4 = pneg %p1159_p2 }
  0xc3   : > { %607 = vmatmul.f32.vlgmr.msra.gmra.mxu2 %v1748_v11 }
  0xc4   : > { %794 = vmatpush.msra.mxu2 %v561_v15  ;;  %768 = vmatpush.msra.mxu1 %v504_v17  ;;  %p1165_p9 = pnand %p1164_p7, %p1160_p4 }
  0xc5   : > { %581 = vmatmul.f32.gmra.mxu1 %v1748_v11  ;;  %755 = vmatmul.f32.gmra.mxu0 %v1748_v11 }
  0xc6   : > { %v343_v21 = vpop.f32.mrf.mxu0  ;;  %795 = vmatpush.msra.mxu2 %v558_v18  ;;  %769 = vmatpush.msra.mxu1 %v501_v20  ;;  %v890_v20 = vld [vmem:[%s2060_s5 + $0x78] sm:$0xff] }
  0xc7   : > { %v344_v23 = vadd.f32 %v1676_v44, %v343_v21 }
  0xc8   : > { %796 = vmatpush.msra.mxu2 %v555_v22  ;;  %770 = vmatpush.msra.mxu1 %v498_v25  ;;  %v888_v25 = vld [vmem:[%s2060_s5 + $0x68] sm:$0xff] }
  0xc9   : > { %v1790_v26 = vmax.f32 %v344_v23, 0.0  ;;  %v889_v23 = vld [vmem:[%s2060_s5 + $0x70] sm:$0xff] }
  0xca   : > { %797 = vmatpush.msra.mxu2 %v552_v27  ;;  %771 = vmatpush.msra.mxu1 %v495_v29 }
  0xcb   : > { %610 = vmatmul.f32.gmra.mxu2 %v1790_v26  ;;  %636 = vmatmul.f32.vlgmr.msra.gmra.mxu3 %v1790_v26 }
  0xcc   : > { %798 = vmatpush.msra.mxu2 %v549_v30  ;;  %772 = vmatpush.msra.mxu1 %v492_v32  ;;  %v886_v30 = vld [vmem:[%s2060_s5 + $0x58] sm:$0xff]  ;;  %v885_v32 = vld [vmem:[%s2060_s5 + $0x50] sm:$0xff] }
  0xcd   : > { %584 = vmatmul.f32.gmra.mxu1 %v1790_v26  ;;  %758 = vmatmul.f32.gmra.mxu0 %v1790_v26 }
  0xce   : > { %v346_v34 = vpop.f32.mrf.mxu0  ;;  %799 = vmatpush.msra.mxu2 %v546_v33  ;;  %773 = vmatpush.msra.mxu1 %v489_v36  ;;  %v884_v33 = vld [vmem:[%s2060_s5 + $0x48] sm:$0xff]  ;;  %v882_v36 = vld [vmem:[%s2060_s5 + $0x38] sm:$0xff] }
  0xcf   : > { %v347_v35 = vadd.f32 %v1676_v44, %v346_v34  ;;  %901 = vmatpush.msra.mxu3 %v890_v20 }
  0xd0   : > { %800 = vmatpush.msra.mxu2 %v543_v37  ;;  %774 = vmatpush.msra.mxu1 %v486_v39  ;;  %v880_v39 = vld [vmem:[%s2060_s5 + $0x28] sm:$0xff] }
  0xd1   : > { %v1824_v38 = vmax.f32 %v347_v35, 0.0  ;;  %902 = vmatpush.msra.mxu3 %v889_v23  ;;  %v883_v35 = vld [vmem:[%s2060_s5 + $0x40] sm:$0xff] }
  0xd2   : > { %801 = vmatpush.msra.mxu2 %v540_v40  ;;  %775 = vmatpush.msra.mxu1 %v483_v41  ;;  %v879_v41 = vld [vmem:[%s2060_s5 + $0x20] sm:$0xff] }
  0xd3   : > { %613 = vmatmul.f32.gmra.mxu2 %v1824_v38  ;;  %639 = vmatmul.f32.gmra.mxu3 %v1824_v38 }
  0xd4   : > { %802 = vmatpush.msra.mxu2 %v537_v42  ;;  %776 = vmatpush.msra.mxu1 %v480_v43  ;;  %v878_v42 = vld [vmem:[%s2060_s5 + $0x18] sm:$0xff] }
  0xd5   : > { %587 = vmatmul.f32.gmra.mxu1 %v1824_v38  ;;  %761 = vmatmul.f32.gmra.mxu0 %v1824_v38 }
  0xd6   : > { %v349_v46 = vpop.f32.mrf.mxu0  ;;  %803 = vmatpush.msra.mxu2 %v534_v45  ;;  %777 = vmatpush.msra.mxu1 %v477_v48  ;;  %v877_v45 = vld [vmem:[%s2060_s5 + $0x10] sm:$0xff]  ;;  %v875_v48 = vld [vmem:[%s2060_s5] sm:$0xff] }
  0xd7   : > { %v350_v47 = vadd.f32 %v1676_v44, %v349_v46  ;;  %903 = vmatpush.msra.mxu3 %v888_v25  ;;  %v876_v46 = vld [vmem:[%s2060_s5 + $0x8] sm:$0xff] }
  0xd8   : > { %804 = vmatpush.msra.mxu2 %v531_v49  ;;  %778 = vmatpush.msra.mxu1 %v474_v51 }
  0xd9   : > { %v359_v50 = vmax.f32 %v350_v47, 0.0  ;;  %904 = vmatpush.msra.mxu3 %v887_v28 }
  0xda   : > { %805 = vmatpush.msra.mxu2 %v528_v52  ;;  %779 = vmatpush.msra.mxu1 %v471_v54 }
  0xdb   : > { %616 = vmatmul.f32.gmra.mxu2 %v359_v50  ;;  %642 = vmatmul.f32.gmra.mxu3 %v359_v50 }
  0xdc   : > { %806 = vmatpush.msra.mxu2 %v525_v55  ;;  %780 = vmatpush.msra.mxu1 %v468_v56 }
  0xdd   : > { %665 = vmatmul.f32.vlgmr.msrb.gmra.mxu1 %v1716_v63  ;;  %905 = vmatpush.msra.mxu3 %v886_v30 }
  0xde   : > { %v352_v59 = vpop.f32.mrf.mxu0  ;;  %807 = vmatpush.msra.mxu2 %v522_v58 }
  0xdf   : > { %v353_v60 = vadd.f32 %v1676_v44, %v352_v59  ;;  %906 = vmatpush.msra.mxu3 %v885_v32 }
  0xe0   : > { %808 = vmatpush.msra.mxu2 %v519_v61 }
  0xe1   : > { %v360_v63 = vmax.f32 %v353_v60, 0.0  ;;  %907 = vmatpush.msra.mxu3 %v884_v33 }
  0xe2   : > { %809 = vmatpush.msra.mxu2 %v516_v0 }
  0xe3   : > { %v417_v1 = vmul.f32 %v411_v62, %v360_v63  ;;  %694 = vmatmul.f32.vlgmr.msrb.gmra.mxu2 %v1748_v11  ;;  %908 = vmatpush.msra.mxu3 %v883_v35 }
  0xe5   : > { %645 = vmatmul.f32.gmra.mxu3 %v417_v1  ;;  %668 = vmatmul.f32.gmra.mxu1 %v1748_v11 }
  0xe6   : > { %909 = vmatpush.msra.mxu3 %v882_v36 }
  0xeb   : > { %697 = vmatmul.f32.gmra.mxu2 %v1790_v26 }
  0xed   : > { %671 = vmatmul.f32.gmra.mxu1 %v1790_v26  ;;  %723 = vmatmul.f32.vlgmr.msrb.gmra.mxu3 %v1790_v26 }
  0xf3   : > { %700 = vmatmul.f32.gmra.mxu2 %v1824_v38 }
  0xf5   : > { %674 = vmatmul.f32.gmra.mxu1 %v1824_v38  ;;  %726 = vmatmul.f32.gmra.mxu3 %v1824_v38 }
  0xfb   : > { %703 = vmatmul.f32.gmra.mxu2 %v359_v50 }
  0xfd   : > { %729 = vmatmul.f32.gmra.mxu3 %v359_v50  ;;  %781 = vmatmul.f32.vlgmr.msra.gmra.mxu1 %v1748_v11 }
 0x103   : > { %810 = vmatmul.f32.vlgmr.msra.gmra.mxu2 %v1790_v26 }
 0x105   : > { %732 = vmatmul.f32.gmra.mxu3 %v417_v1  ;;  %784 = vmatmul.f32.gmra.mxu1 %v1790_v26 }
 0x10b   : > { %813 = vmatmul.f32.gmra.mxu2 %v1824_v38 }
 0x10d   : > { %787 = vmatmul.f32.gmra.mxu1 %v1824_v38  ;;  %v881_v38 = vld [vmem:[%s2060_s5 + $0x30] sm:$0xff] }
 0x10e   : > { %910 = vmatpush.msra.mxu3 %v881_v38 }
 0x110   : > { %911 = vmatpush.msra.mxu3 %v880_v39 }
 0x112   : > { %912 = vmatpush.msra.mxu3 %v879_v41 }
 0x113   : > { %816 = vmatmul.f32.gmra.mxu2 %v359_v50 }
 0x114   : > { %913 = vmatpush.msra.mxu3 %v878_v42 }
 0x115   : > { %790 = vmatmul.f32.gmra.mxu1 %v359_v50 }
 0x116   : > { %914 = vmatpush.msra.mxu3 %v877_v45 }
 0x118   : > { %915 = vmatpush.msra.mxu3 %v876_v46 }
 0x11a   : > { %916 = vmatpush.msra.mxu3 %v875_v48 }
 0x11b   : > { %819 = vmatmul.f32.gmra.mxu2 %v417_v1 }
 0x13a   : > { %v579_v44 = vpop.f32.mrf.mxu1  ;;  %v753_v50 = vpop.f32.mrf.mxu0 }
 0x142   : > { %v582_v57 = vpop.f32.mrf.mxu1  ;;  %v756_v58 = vpop.f32.mrf.mxu0 }
 0x146   : > { %v608_v2 = vpop.f32.mrf.mxu2 }
 0x147   : > { %v609_v3 = vadd.f32 %v608_v2, %v579_v44 }
 0x14a   : > { %v585_v4 = vpop.f32.mrf.mxu1 }
 0x14e   : > { %v611_v5 = vpop.f32.mrf.mxu2  ;;  %v637_v6 = vpop.f32.mrf.mxu3 }
 0x14f   : > { %v612_v7 = vadd.f32 %v611_v5, %v582_v57  ;;  %v1900_v11 = vadd.f32 %v637_v6, %v609_v3 }
 0x151   : > { %v829_v16 = vrot.slane %v1900_v11, 7 }
 0x152   : > { %v588_v9 = vpop.f32.mrf.mxu1 }
 0x156   : > { %v614_v12 = vpop.f32.mrf.mxu2  ;;  %v640_v13 = vpop.f32.mrf.mxu3 }
 0x157   : > { %v615_v14 = vadd.f32 %v614_v12, %v585_v4  ;;  %v641_v15 = vadd.f32 %v640_v13, %v612_v7  ;;  %v1238_v4 = vmov 0.0  }
 0x158   : > { %v1049_v5 = vsel %vm823_vm3, 1.0, %v1238_v4  ;;  %v1050_v7 = vsel %vm826_vm4, 1.0, %v1238_v4 }
 0x159   : > { %v830_v17 = vrot.slane %v641_v15, 7  ;;  %v1139_v15 = vld [vmem:[%s2059_s4] ss:$0 sm:$0xff] }
 0x15a   : > { %v666_v18 = vpop.f32.mrf.mxu1 }
 0x15b   : > { %v1908_v19 = vsel %vm833_vm2, %v829_v16, %v830_v17 }
 0x15c   : > { %v839_v30 = vmul.f32 %v1049_v5, %v1908_v19 }
 0x15e   : > { %v617_v21 = vpop.f32.mrf.mxu2  ;;  %v643_v22 = vpop.f32.mrf.mxu3 }
 0x15f   : > { %v1916_v24 = vadd.f32 %v643_v22, %v615_v14  ;;  %v618_v53 = vadd.f32 %v617_v21, %v588_v9  ;;  %v759_v9 = vpop.f32.mrf.mxu0 }
 0x161   : > { %v831_v26 = vrot.slane %v1916_v24, 7 }
 0x162   : > { %v1922_v27 = vpop.f32.mrf.mxu1 }
 0x163   : > { %v1931_v29 = vsel %vm833_vm2, %v830_v17, %v831_v26 }
 0x166   : > { %v695_v31 = vpop.f32.mrf.mxu2 }
 0x167   : > { %v696_v0 = vadd.f32 %v695_v31, %v666_v18  ;;  %v762_v35 = vpop.f32.mrf.mxu0 }
 0x168   : > { %v646_v47 = vpop.f32.mrf.mxu3 }
 0x169   : > { %v647_v56 = vadd.f32 %v646_v47, %v618_v53 }
 0x16a   : > { %v1942_v34 = vpop.f32.mrf.mxu1 }
 0x16b   : > { %v832_v59 = vrot.slane %v647_v56, 7 }
 0x16d   : > { %v837_v44 = vsel %vm833_vm2, %v832_v59, %v829_v16 }
 0x16e   : > { %v698_v37 = vpop.f32.mrf.mxu2  ;;  %v838_v12 = vmul.f32 %v1049_v5, %v837_v44  ;;  %v1053_v44 = vld [vmem:[%s1403_s9 + $0x10] sm:$0xff] }
 0x16f   : > { %v699_v17 = vadd.f32 %v698_v37, %v1922_v27 }
 0x170   : > { %v724_v52 = vpop.f32.mrf.mxu3 }
 0x171   : > { %v725_v2 = vadd.f32 %v724_v52, %v696_v0  ;;  %v834_v52 = vsel %vm833_vm2, %v831_v26, %v832_v59 }
 0x172   : > { %v1956_v40 = vpop.f32.mrf.mxu1 }
 0x173   : > { %v842_v14 = vadd.f32 %v838_v12, %v725_v2  ;;  %v1055_v12 = vld [vmem:[%s1403_s9 + $0x20] sm:$0xff] }
 0x176   : > { %v701_v43 = vpop.f32.mrf.mxu2 }
 0x177   : > { %v702_v27 = vadd.f32 %v701_v43, %v1942_v34 }
 0x178   : > { %v727_v61 = vpop.f32.mrf.mxu3 }
 0x179   : > { %v728_v23 = vadd.f32 %v727_v61, %v699_v17  ;;  %v1052_v61 = vld [vmem:[%s1403_s9 + $0x8] sm:$0xff] }
 0x17a   : > { %v782_v49 = vpop.f32.mrf.mxu1 }
 0x17b   : > { %v783_v60 = vadd.f32 %v782_v49, %v753_v50  ;;  %v843_v36 = vadd.f32 %v839_v30, %v728_v23  ;;  %v840_v49 = vmul.f32 %v1049_v5, %v1931_v29  ;;  %v841_v29 = vmul.f32 %v1049_v5, %v834_v52  ;;  %v1054_v5 = vld [vmem:[%s1403_s9 + $0x18] sm:$0xff] }
 0x17e   : > { %v704_v51 = vpop.f32.mrf.mxu2 }
 0x17f   : > { %v705_v19 = vadd.f32 %v704_v51, %v1956_v40 }
 0x180   : > { %v730_v21 = vpop.f32.mrf.mxu3 }
 0x181   : > { %v731_v45 = vadd.f32 %v730_v21, %v702_v27 }
 0x182   : > { %v785_v54 = vpop.f32.mrf.mxu1 }
 0x183   : > { %v786_v62 = vadd.f32 %v785_v54, %v756_v58  ;;  %v844_v53 = vadd.f32 %v840_v49, %v731_v45 }
 0x186   : > { %v811_v55 = vpop.f32.mrf.mxu2 }
 0x187   : > { %v812_v63 = vadd.f32 %v811_v55, %v783_v60 }
 0x188   : > { %v733_v47 = vpop.f32.mrf.mxu3 }
 0x189   : > { %v846_v6 = vrot.slane %v812_v63, 1  ;;  %v734_v54 = vadd.f32 %v733_v47, %v705_v19 }
 0x18a   : > { %v788_v3 = vpop.f32.mrf.mxu1 }
 0x18b   : > { %v789_v16 = vadd.f32 %v788_v3, %v759_v9  ;;  %v845_v24 = vadd.f32 %v841_v29, %v734_v54 }
 0x18e   : > { %v814_v1 = vpop.f32.mrf.mxu2 }
 0x18f   : > { %v815_v57 = vadd.f32 %v814_v1, %v786_v62 }
 0x191   : > { %v847_v8 = vrot.slane %v815_v57, 1 }
 0x192   : > { %v791_v31 = vpop.f32.mrf.mxu1 }
 0x193   : > { %v853_v13 = vsel %vm850_vm5, %v846_v6, %v847_v8  ;;  %v792_v39 = vadd.f32 %v791_v31, %v762_v35 }
 0x194   : > { %v855_v11 = vmul.f32 %v1050_v7, %v853_v13 }
 0x196   : > { %v859_v18 = vadd.f32 %v855_v11, %v842_v14  ;;  %v817_v20 = vpop.f32.mrf.mxu2 }
 0x197   : > { %v818_v22 = vadd.f32 %v817_v20, %v789_v16 }
 0x198   : > { %v867_v25 = vadd.f32 %v1139_v15, %v859_v18 }
 0x199   : > { %v848_v28 = vrot.slane %v818_v22, 1 }
 0x19a   : > { %v871_v32 = vmax.f32 %v867_v25, 0.0 }
 0x19b   : > { %v852_v33 = vsel %vm850_vm5, %v847_v8, %v848_v28 }
 0x19c   : > { %917 = vmatmul.f32.vlgmr.msra.gmra.mxu3 %v871_v32  ;;  %v856_v38 = vmul.f32 %v1050_v7, %v852_v33 }
 0x19e   : > { %v820_v37 = vpop.f32.mrf.mxu2  ;;  %v860_v41 = vadd.f32 %v856_v38, %v843_v36 }
 0x19f   : > { %v821_v42 = vadd.f32 %v820_v37, %v792_v39 }
 0x1a0   : > { %v868_v46 = vadd.f32 %v1139_v15, %v860_v41 }
 0x1a1   : > { %v849_v48 = vrot.slane %v821_v42, 1 }
 0x1a2   : > { %v872_v50 = vmax.f32 %v868_v46, 0.0 }
 0x1a3   : > { %v851_v34 = vsel %vm850_vm5, %v848_v28, %v849_v48  ;;  %v854_v43 = vsel %vm850_vm5, %v849_v48, %v846_v6 }
 0x1a4   : > { %920 = vmatmul.f32.gmra.mxu3 %v872_v50  ;;  %v857_v40 = vmul.f32 %v1050_v7, %v851_v34  ;;  %v858_v55 = vmul.f32 %v1050_v7, %v854_v43 }
 0x1a6   : > { %v861_v51 = vadd.f32 %v857_v40, %v844_v53  ;;  %v862_v26 = vadd.f32 %v858_v55, %v845_v24 }
 0x1a8   : > { %v869_v56 = vadd.f32 %v1139_v15, %v861_v51  ;;  %v870_v59 = vadd.f32 %v1139_v15, %v862_v26 }
 0x1aa   : > { %v873_v58 = vmax.f32 %v869_v56, 0.0  ;;  %v874_v60 = vmax.f32 %v870_v59, 0.0 }
 0x1ac   : > { %923 = vmatmul.f32.gmra.mxu3 %v873_v58 }
 0x1b4   : > { %926 = vmatmul.f32.gmra.mxu3 %v874_v60 }
 0x21f   : > { %v918_v62 = vpop.f32.mrf.mxu3 }
 0x220   : > { %v919_v63 = vadd.f32 %v1140_v10, %v918_v62 }
 0x222   : > { %v930_v0 = vadd.f32 %v1052_v61, %v919_v63 }
 0x224   : > { %v934_v1 = vmax.f32 %v930_v0, 0.0 }
 0x226   : > { %938 = vst [vmem:[%s285_s21] sm:$0xff] %v934_v1 }
 0x227   : > { %v921_v57 = vpop.f32.mrf.mxu3 }
 0x228   : > { %v922_v2 = vadd.f32 %v1140_v10, %v921_v57 }
 0x22a   : > { %v931_v3 = vadd.f32 %v1053_v44, %v922_v2 }
 0x22c   : > { %v935_v4 = vmax.f32 %v931_v3, 0.0 }
 0x22e   : > { %939 = vst [vmem:[%s285_s21 + $0x8] sm:$0xff] %v935_v4 }
 0x22f   : > { %v924_v6 = vpop.f32.mrf.mxu3 }
 0x230   : > { %v925_v7 = vadd.f32 %v1140_v10, %v924_v6 }
 0x232   : > { %v932_v8 = vadd.f32 %v1054_v5, %v925_v7 }
 0x234   : > { %v936_v9 = vmax.f32 %v932_v8, 0.0 }
 0x236   : > { %940 = vst [vmem:[%s285_s21 + $0x10] sm:$0xff] %v936_v9 }
 0x237   : > { %v927_v13 = vpop.f32.mrf.mxu3 }
 0x238   : > { %v928_v14 = vadd.f32 %v1140_v10, %v927_v13 }
 0x23a   : > { %v933_v11 = vadd.f32 %v1055_v12, %v928_v14 }
 0x23c   : > { %v937_v15 = vmax.f32 %v933_v11, 0.0 }
 0x23e   : > { %941 = vst [vmem:[%s285_s21 + $0x18] sm:$0xff] %v937_v15 }
 0x23f   : > { %1168 = shalt.err (!%p1165_p9)
}
 0x240   : > { %s1239_s18 = smov 128   ;;  %s1240_s21 = smov 8  }
 0x241   : > { %1063 = dma.vmem_to_hbm [thread:$0]  (%p1332_p3), %s958_s11, 512, %s960_s27, %s943_s28, %s1239_s18, %s1239_s18, %s1240_s21  }
 0x242 PF: > { %p1069_p10 = scmp.ge.s32.totalorder %s1235_s8, 2  ;;  %s974_s30 = sand.u32 1, %s1207_s24  }
 0x243   : > { %s975_s12 = scalar_lea.sflag [#allocation3], %s974_s30 }
 0x244   : > { %p1066_p11 = pnand %p1069_p10, %p1341_p8 }
 0x246   : > { %p1067_p12 = pneg %p1066_p11 }
 0x248   : > { %1202 = dma.done.wait (%p1067_p12), %s975_s12, 512  }
 0x249   : > { %1204 = vsyncadd (%p1067_p12), %s975_s12, 4294966784  ;;  %s20_s8 = sadd.s32 1, %s1235_s8   ;;  %s2071_s28 = sld [smem:[#allocation5_spill]] }
 0x24a   : > { %p17_p13 = scmp.ge.s32.totalorder %s20_s8, 6   ;;  %s2072_s14 = sld [smem:[#allocation6_spill]] }
 0x24b   : > { %s2073_s30 = sld [smem:[#allocation7_spill]]  ;;  %s2074_s24 = smov %s1211_s25 }
 0x24c   : > { %s2075_s25 = smov %s1215_s26  ;;  %s2076_s26 = smov %s1350_s19 }
 0x24d   : > { %s2077_s27 = smov %s1227_s29  ;;  %19 = sbr.rel (!%p17_p13) target bundleno = 5 (0x5), region = 85 }
 0x250   : > { %s2078_s29 = smov %s2072_s14 }
 0x252   :  { %981 = vsyncpa [#allocation3], 1 }
 0x253   :  { %983 = vsyncpa [#allocation3 + $0x1], 1 }

</bundles_post_ra>
